<compile_context>
chip_gen: v7x
topology: tpu7x:2x2x1
jax: 0.10.0
libtpu: 0.0.40
codegen_flags: <defaults>
</compile_context>

<pallas_src>
import functools

import jax
import jax.numpy as jnp
import numpy as np
from jax.experimental import pallas as pl
from jax.experimental.pallas import tpu as pltpu


def _round_up(x, m):
    return ((x + m - 1) // m) * m


def _cdiv(a, b):
    return -(-a // b)


# -----------------------------------------------------------------------------
# Pallas kernel: one batch tile of the mean MLP
# -----------------------------------------------------------------------------
def _mean_net_kernel(n_hidden, obs_ref, w_in_ref, b_in_ref, *rest):
    """Per-tile mean-net forward.

    obs_ref  : (TB, ob_dim)                   native-width observation tile
    w_in_ref : (ob_dim, H_pad)   bf16/f32     first-layer weight  (resident)
    b_in_ref : (1, H_pad)        f32          first-layer bias    (resident)
    [w_hid_ref: (n_hidden, H_pad, H_pad), b_hid_ref: (n_hidden, H_pad)]  (if n_hidden > 0)
    w_out_ref: (H_pad, A_pad)                 last-layer weight   (resident)
    b_out_ref: (1, A_pad)        f32          last-layer bias     (resident)
    mean_ref : (TB, A_pad)       f32          lane-dense padded mean output
    """
    if n_hidden > 0:
        w_hid_ref, b_hid_ref, w_out_ref, b_out_ref, mean_ref = rest
    else:
        w_out_ref, b_out_ref, mean_ref = rest

    # First hidden layer: Linear(ob_dim -> size) + tanh.
    # MXU operands in the (narrow) weight dtype, f32 accumulation, f32 bias/tanh.
    x = obs_ref[...]
    h = jnp.tanh(
        jnp.dot(x.astype(w_in_ref.dtype), w_in_ref[...],
                preferred_element_type=jnp.float32)
        + b_in_ref[...]
    )

    # Remaining hidden layers: Linear(size -> size) + tanh.
    # Zero padding is self-consistent: padded weight rows/cols and padded bias lanes are
    # zero, and tanh(0) = 0, so padded activation lanes stay exactly zero.
    for i in range(n_hidden):
        h = jnp.tanh(
            jnp.dot(h.astype(w_hid_ref.dtype), w_hid_ref[i],
                    preferred_element_type=jnp.float32)
            + b_hid_ref[pl.ds(i, 1), :]
        )

    # Output layer: Linear(size -> ac_dim), identity output activation.
    mean_ref[...] = (
        jnp.dot(h.astype(w_out_ref.dtype), w_out_ref[...],
                preferred_element_type=jnp.float32)
        + b_out_ref[...]
    ).astype(mean_ref.dtype)


# -----------------------------------------------------------------------------
# One-time parameter packing (hoisted out of the per-call path)
# -----------------------------------------------------------------------------
def pack_params(weights, biases, param_dtype=jnp.bfloat16):
    """weights[i]: (in_i, out_i); biases[i]: (1, out_i). Returns padded/packed buffers."""
    n_linear = len(weights)
    assert n_linear >= 2, "expects at least one hidden layer (n_layers >= 1)"
    ob_dim, size = weights[0].shape
    ac_dim = weights[-1].shape[1]
    H_pad = _round_up(size, 128)
    A_pad = _round_up(ac_dim, 128)
    n_hidden = n_linear - 2  # hidden->hidden layers

    w_in = jnp.zeros((ob_dim, H_pad), param_dtype)
    w_in = w_in.at[:, :size].set(weights[0].astype(param_dtype))
    b_in = jnp.zeros((1, H_pad), jnp.float32)
    b_in = b_in.at[:, :size].set(biases[0].reshape(1, -1).astype(jnp.float32))

    if n_hidden > 0:
        w_hid = jnp.zeros((n_hidden, H_pad, H_pad), param_dtype)
        b_hid = jnp.zeros((n_hidden, H_pad), jnp.float32)
        for i in range(n_hidden):
            w_hid = w_hid.at[i, :size, :size].set(weights[1 + i].astype(param_dtype))
            b_hid = b_hid.at[i, :size].set(biases[1 + i].reshape(-1).astype(jnp.float32))
    else:
        w_hid, b_hid = None, None

    w_out = jnp.zeros((H_pad, A_pad), param_dtype)
    w_out = w_out.at[:size, :ac_dim].set(weights[-1].astype(param_dtype))
    b_out = jnp.zeros((1, A_pad), jnp.float32)
    b_out = b_out.at[:, :ac_dim].set(biases[-1].reshape(1, -1).astype(jnp.float32))

    return {"w_in": w_in, "b_in": b_in, "w_hid": w_hid, "b_hid": b_hid,
            "w_out": w_out, "b_out": b_out}


# -----------------------------------------------------------------------------
# Forward wrapper (jittable)
# -----------------------------------------------------------------------------
def mlp_policy_forward(obs, params, logstd):
    """obs: (B, ob_dim); params: output of pack_params; logstd: (1, ac_dim) or (ac_dim,).

    Returns (batch_mean, batch_scale_tril) — the tensors parameterizing
    MultivariateNormal(batch_mean, scale_tril=batch_scale_tril).
    """
    w_in, b_in = params["w_in"], params["b_in"]
    w_hid, b_hid = params["w_hid"], params["b_hid"]
    w_out, b_out = params["w_out"], params["b_out"]

    B, ob_dim = obs.shape
    assert w_in.shape[0] == ob_dim
    H_pad = w_in.shape[1]
    A_pad = w_out.shape[1]
    ac_dim = int(np.prod(logstd.shape))
    n_hidden = 0 if w_hid is None else w_hid.shape[0]
    w_bytes = jnp.dtype(w_in.dtype).itemsize

    # ---- Tile size from a VMEM budget (conservative across v5e / v6e / v7x) ------------
    OB_pad = _round_up(ob_dim, 128)                     # lane padding of obs VMEM buffer
    weight_bytes = 2 * (                                # 2x: default double-buffered inputs
        _round_up(ob_dim, 8) * H_pad * w_bytes          # w_in
        + 8 * H_pad * 4                                 # b_in
        + n_hidden * H_pad * H_pad * w_bytes            # w_hid
        + (_round_up(n_hidden, 8) * H_pad * 4 if n_hidden else 0)  # b_hid
        + H_pad * A_pad * w_bytes                       # w_out
        + 8 * A_pad * 4                                 # b_out
    )
    VMEM_BUDGET = 40 << 20                              # leaves headroom on v7x (64 MiB)
    per_row = 2 * 4 * (OB_pad + A_pad)                  # dbl-buffered obs in + f32 mean out
    tb_budget = max(8, ((VMEM_BUDGET - weight_bytes) // per_row) // 8 * 8)
    tb_budget = min(tb_budget, 4096)

    B8 = _round_up(B, 8)
    TB = min(tb_budget, B8)
    # Megacore (v7x): prefer >= 2 batch tiles so ("parallel",) shards across both cores.
    if B8 >= 16 and _cdiv(B8, TB) < 2:
        TB = _round_up(_cdiv(B8, 2), 8)
    num_tiles = _cdiv(B8, TB)
    B_pad = num_tiles * TB

    obs_f32 = obs.astype(jnp.float32)
    if B_pad != B:
        obs_f32 = jnp.pad(obs_f32, ((0, B_pad - B), (0, 0)))  # batch-only pad (cheap)

    vmem_limit = int(min(64 << 20,
                         max(32 << 20, weight_bytes + per_row * TB + (8 << 20))))

    in_specs = [
        pl.BlockSpec((TB, ob_dim), lambda i: (i, 0)),          # obs tile (native width)
        pl.BlockSpec(w_in.shape, lambda i: (0, 0)),            # resident weights/biases
        pl.BlockSpec(b_in.shape, lambda i: (0, 0)),
    ]
    args = [obs_f32, w_in, b_in]
    if n_hidden > 0:
        in_specs += [
            pl.BlockSpec(w_hid.shape, lambda i: (0, 0, 0)),
            pl.BlockSpec(b_hid.shape, lambda i: (0, 0)),
        ]
        args += [w_hid, b_hid]
    in_specs += [
        pl.BlockSpec(w_out.shape, lambda i: (0, 0)),
        pl.BlockSpec(b_out.shape, lambda i: (0, 0)),
    ]
    args += [w_out, b_out]

    kernel = functools.partial(_mean_net_kernel, n_hidden)
    mean_pad = pl.pallas_call(
        kernel,
        out_shape=jax.ShapeDtypeStruct((B_pad, A_pad), jnp.float32),
        grid_spec=pltpu.PrefetchScalarGridSpec(
            num_scalar_prefetch=0,
            grid=(num_tiles,),
            in_specs=in_specs,
            out_specs=pl.BlockSpec((TB, A_pad), lambda i: (i, 0)),  # lane-dense mean slab
        ),
        compiler_params=pltpu.CompilerParams(
            dimension_semantics=("parallel",),
            vmem_limit_bytes=vmem_limit,
        ),
    )(*args)

    batch_mean = mean_pad[:B, :ac_dim]

    # scale_tril = diag(exp(logstd)) broadcast over the batch: rank-1 information, built in
    # the wrapper instead of being written B times by the kernel.
    scale_tril = jnp.diag(jnp.exp(logstd.reshape(-1)))
    batch_scale_tril = jnp.broadcast_to(scale_tril[None], (B, ac_dim, ac_dim))

    # TODO(synk): torch.distributions.MultivariateNormal itself has no Pallas equivalent;
    # (batch_mean, batch_scale_tril) fully parameterize it.
    return batch_mean, batch_scale_tril


# -----------------------------------------------------------------------------
# Deterministic parameter construction (mimics nn.Linear default init ranges)
# -----------------------------------------------------------------------------
def build_params(key, ob_dim, ac_dim, n_layers, size):
    dims = [ob_dim] + [size] * n_layers + [ac_dim]
    weights, biases = [], []
    for i in range(len(dims) - 1):
        fan_in, fan_out = dims[i], dims[i + 1]
        k = 1.0 / np.sqrt(fan_in)
        key, kw, kb = jax.random.split(key, 3)
        weights.append(jax.random.uniform(kw, (fan_in, fan_out), jnp.float32, -k, k))
        biases.append(jax.random.uniform(kb, (1, fan_out), jnp.float32, -k, k))
    # logstd initialized to zeros, exactly like nn.Parameter(torch.zeros(ac_dim))
    logstd = jnp.zeros((1, ac_dim), jnp.float32)
    return weights, biases, logstd


def reference_forward(obs, weights, biases, logstd, param_dtype=jnp.float32):
    h = obs.astype(jnp.float32)
    for w, b in zip(weights[:-1], biases[:-1]):
        h = jnp.tanh(
            jnp.dot(h.astype(param_dtype), w.astype(param_dtype),
                    preferred_element_type=jnp.float32)
            + b.reshape(1, -1).astype(jnp.float32))
    mean = (jnp.dot(h.astype(param_dtype), weights[-1].astype(param_dtype),
                    preferred_element_type=jnp.float32)
            + biases[-1].reshape(1, -1).astype(jnp.float32))
    scale = jnp.diag(jnp.exp(logstd.reshape(-1)))
    tril = jnp.broadcast_to(scale[None], (obs.shape[0],) + scale.shape)
    return mean, tril


if __name__ == "__main__":
    # Small shapes consistent with the module: obs (B, ob_dim) -> action dist over ac_dim.
    B, ob_dim, ac_dim, n_layers, size = 4, 16, 4, 2, 32

    key = jax.random.PRNGKey(0)
    key, k_obs = jax.random.split(key)
    obs = jax.random.normal(k_obs, (B, ob_dim), jnp.float32)

    weights, biases, logstd = build_params(key, ob_dim, ac_dim, n_layers, size)

    # Pack once (hoisted out of the per-call path), then run the jitted forward.
    params = pack_params(weights, biases, param_dtype=jnp.bfloat16)
    forward = jax.jit(mlp_policy_forward)
    mean, tril = forward(obs, params, logstd)
    jax.block_until_ready((mean, tril))

    # Tight check vs. a JAX reference using the same bf16 operands / f32 accumulation.
    ref_mean_bf16, ref_tril = reference_forward(obs, weights, biases, logstd,
                                                param_dtype=jnp.bfloat16)
    np.testing.assert_allclose(np.asarray(mean), np.asarray(ref_mean_bf16),
                               rtol=2e-3, atol=2e-3)
    # Loose sanity check vs. the pure-f32 reference (bf16 operand rounding only).
    ref_mean_f32, _ = reference_forward(obs, weights, biases, logstd,
                                        param_dtype=jnp.float32)
    np.testing.assert_allclose(np.asarray(mean), np.asarray(ref_mean_f32),
                               rtol=5e-2, atol=5e-2)
    np.testing.assert_allclose(np.asarray(tril), np.asarray(ref_tril),
                               rtol=1e-6, atol=1e-6)

    print("KERNEL_OK")
</pallas_src>

<mosaic_0001>
module attributes {stable_mosaic.version = 11 : i64} {
  func.func @_mean_net_kernel(%arg0: i32, %arg1: memref<8x16xf32, #tpu.memory_space<vmem>>, %arg2: memref<16x128xbf16, #tpu.memory_space<vmem>>, %arg3: memref<1x128xf32, #tpu.memory_space<vmem>>, %arg4: memref<1x128x128xbf16, #tpu.memory_space<vmem>>, %arg5: memref<1x128xf32, #tpu.memory_space<vmem>>, %arg6: memref<128x128xbf16, #tpu.memory_space<vmem>>, %arg7: memref<1x128xf32, #tpu.memory_space<vmem>>, %arg8: memref<8x128xf32, #tpu.memory_space<vmem>>) attributes {dimension_semantics = [#tpu.dimension_semantics<parallel>], iteration_bounds = array<i64: 1>, scalar_prefetch = 0 : i64, scratch_operands = 0 : i64, tpu.core_type = #tpu.core_type<tc>, window_params = [{transform_indices = @transform_0, window_bounds = array<i64: 8, 16>}, {pipeline_mode = #tpu.pipeline_mode<synchronous>, transform_indices = @transform_1, window_bounds = array<i64: 16, 128>}, {pipeline_mode = #tpu.pipeline_mode<synchronous>, transform_indices = @transform_2, window_bounds = array<i64: 1, 128>}, {pipeline_mode = #tpu.pipeline_mode<synchronous>, transform_indices = @transform_3, window_bounds = array<i64: 1, 128, 128>}, {pipeline_mode = #tpu.pipeline_mode<synchronous>, transform_indices = @transform_4, window_bounds = array<i64: 1, 128>}, {pipeline_mode = #tpu.pipeline_mode<synchronous>, transform_indices = @transform_5, window_bounds = array<i64: 128, 128>}, {pipeline_mode = #tpu.pipeline_mode<synchronous>, transform_indices = @transform_6, window_bounds = array<i64: 1, 128>}, {transform_indices = @transform_7, window_bounds = array<i64: 8, 128>}]} {
    %c0 = arith.constant 0 : index
    %c0_0 = arith.constant 0 : index
    %0 = vector.load %arg1[%c0, %c0_0] : memref<8x16xf32, #tpu.memory_space<vmem>>, vector<8x16xf32>
    %1 = arith.truncf %0 : vector<8x16xf32> to vector<8x16xbf16>
    %c0_1 = arith.constant 0 : index
    %c0_2 = arith.constant 0 : index
    %2 = vector.load %arg2[%c0_1, %c0_2] : memref<16x128xbf16, #tpu.memory_space<vmem>>, vector<16x128xbf16>
    %cst = arith.constant dense<0.000000e+00> : vector<8x128xf32>
    %3 = tpu.matmul %1, %2, %cst {dimension_numbers = #tpu.dot_dimension_numbers<[1], [0], [0], [1], [0, 0, 1, 1], [], []>} : vector<8x16xbf16>, vector<16x128xbf16>, vector<8x128xf32> -> vector<8x128xf32>
    %c0_3 = arith.constant 0 : index
    %c0_4 = arith.constant 0 : index
    %4 = vector.load %arg3[%c0_3, %c0_4] : memref<1x128xf32, #tpu.memory_space<vmem>>, vector<1x128xf32>
    %5 = vector.broadcast %4 : vector<1x128xf32> to vector<8x128xf32>
    %6 = arith.addf %3, %5 : vector<8x128xf32>
    %7 = math.tanh %6 : vector<8x128xf32>
    %8 = arith.truncf %7 : vector<8x128xf32> to vector<8x128xbf16>
    %c0_5 = arith.constant 0 : index
    %c0_6 = arith.constant 0 : index
    %c0_7 = arith.constant 0 : index
    %9 = vector.load %arg4[%c0_5, %c0_6, %c0_7] : memref<1x128x128xbf16, #tpu.memory_space<vmem>>, vector<1x128x128xbf16>
    %10 = vector.shape_cast %9 : vector<1x128x128xbf16> to vector<128x128xbf16>
    %cst_8 = arith.constant dense<0.000000e+00> : vector<8x128xf32>
    %11 = tpu.matmul %8, %10, %cst_8 {dimension_numbers = #tpu.dot_dimension_numbers<[1], [0], [0], [1], [0, 0, 1, 1], [], []>} : vector<8x128xbf16>, vector<128x128xbf16>, vector<8x128xf32> -> vector<8x128xf32>
    %c0_9 = arith.constant 0 : index
    %c0_10 = arith.constant 0 : index
    %12 = vector.load %arg5[%c0_9, %c0_10] : memref<1x128xf32, #tpu.memory_space<vmem>>, vector<1x128xf32>
    %13 = vector.broadcast %12 : vector<1x128xf32> to vector<8x128xf32>
    %14 = arith.addf %11, %13 : vector<8x128xf32>
    %15 = math.tanh %14 : vector<8x128xf32>
    %16 = arith.truncf %15 : vector<8x128xf32> to vector<8x128xbf16>
    %c0_11 = arith.constant 0 : index
    %c0_12 = arith.constant 0 : index
    %17 = vector.load %arg6[%c0_11, %c0_12] : memref<128x128xbf16, #tpu.memory_space<vmem>>, vector<128x128xbf16>
    %cst_13 = arith.constant dense<0.000000e+00> : vector<8x128xf32>
    %18 = tpu.matmul %16, %17, %cst_13 {dimension_numbers = #tpu.dot_dimension_numbers<[1], [0], [0], [1], [0, 0, 1, 1], [], []>} : vector<8x128xbf16>, vector<128x128xbf16>, vector<8x128xf32> -> vector<8x128xf32>
    %c0_14 = arith.constant 0 : index
    %c0_15 = arith.constant 0 : index
    %19 = vector.load %arg7[%c0_14, %c0_15] : memref<1x128xf32, #tpu.memory_space<vmem>>, vector<1x128xf32>
    %20 = vector.broadcast %19 : vector<1x128xf32> to vector<8x128xf32>
    %21 = arith.addf %18, %20 : vector<8x128xf32>
    %c0_16 = arith.constant 0 : index
    %c0_17 = arith.constant 0 : index
    %22 = vector.load %arg8[%c0_16, %c0_17] : memref<8x128xf32, #tpu.memory_space<vmem>>, vector<8x128xf32>
    tpu.vector_store %arg8[%c0_16, %c0_17], %21 {strides = array<i32>} : memref<8x128xf32, #tpu.memory_space<vmem>>, vector<8x128xf32>,
    return
  }
  func.func @transform_0(%arg0: i32) -> (i32, i32) {
    %c0_i32 = arith.constant 0 : i32
    %c0_i32_0 = arith.constant 0 : i32
    return %arg0, %c0_i32 : i32, i32
  }
  func.func @transform_1(%arg0: i32) -> (i32, i32) {
    %c0_i32 = arith.constant 0 : i32
    %c0_i32_0 = arith.constant 0 : i32
    %c0_i32_1 = arith.constant 0 : i32
    return %c0_i32, %c0_i32_0 : i32, i32
  }
  func.func @transform_2(%arg0: i32) -> (i32, i32) {
    %c0_i32 = arith.constant 0 : i32
    %c0_i32_0 = arith.constant 0 : i32
    %c0_i32_1 = arith.constant 0 : i32
    return %c0_i32, %c0_i32_0 : i32, i32
  }
  func.func @transform_3(%arg0: i32) -> (i32, i32, i32) {
    %c0_i32 = arith.constant 0 : i32
    %c0_i32_0 = arith.constant 0 : i32
    %c0_i32_1 = arith.constant 0 : i32
    %c0_i32_2 = arith.constant 0 : i32
    return %c0_i32, %c0_i32_0, %c0_i32_1 : i32, i32, i32
  }
  func.func @transform_4(%arg0: i32) -> (i32, i32) {
    %c0_i32 = arith.constant 0 : i32
    %c0_i32_0 = arith.constant 0 : i32
    %c0_i32_1 = arith.constant 0 : i32
    return %c0_i32, %c0_i32_0 : i32, i32
  }
  func.func @transform_5(%arg0: i32) -> (i32, i32) {
    %c0_i32 = arith.constant 0 : i32
    %c0_i32_0 = arith.constant 0 : i32
    %c0_i32_1 = arith.constant 0 : i32
    return %c0_i32, %c0_i32_0 : i32, i32
  }
  func.func @transform_6(%arg0: i32) -> (i32, i32) {
    %c0_i32 = arith.constant 0 : i32
    %c0_i32_0 = arith.constant 0 : i32
    %c0_i32_1 = arith.constant 0 : i32
    return %c0_i32, %c0_i32_0 : i32, i32
  }
  func.func @transform_7(%arg0: i32) -> (i32, i32) {
    %c0_i32 = arith.constant 0 : i32
    %c0_i32_0 = arith.constant 0 : i32
    return %arg0, %c0_i32 : i32, i32
  }
}

</mosaic_0001>

<bundles_post_ra>
// kernel: mlp_policy_forward.1
= control target key start
LH: loop header
LB: loop body
LE: loop exit
PB: predicated region body
PF: predicated region fallthrough
CT: control target
= control target key end

     0   :  { %12 = vsyncpa [#allocation3], 0  ;;  %s622_s0 = inlined_call_operand.vmem [shape: f32[8,16], index: 0, kind: input, shape index: {}]   ;;  %s623_s1 = inlined_call_operand.vmem [shape: bf16[16,128], index: 1, kind: input, shape index: {}]   ;;  %s624_s2 = inlined_call_operand.vmem [shape: f32[1,128], index: 2, kind: input, shape index: {}]   ;;  %s625_s3 = inlined_call_operand.hbm [shape: bf16[1,128,128], index: 3, kind: input, shape index: {}]   ;;  %s626_s4 = inlined_call_operand.vmem [shape: f32[1,128], index: 4, kind: input, shape index: {}]   ;;  %s627_s5 = inlined_call_operand.hbm [shape: bf16[128,128], index: 5, kind: input, shape index: {}]   ;;  %s628_s6 = inlined_call_operand.vmem [shape: f32[1,128], index: 6, kind: input, shape index: {}]   ;;  %s629_s7 = inlined_call_operand.vmem [shape: f32[8,128], index: 7, kind: output, shape index: {}]  }
   0x1   :  { %13 = vsyncpa [#allocation5], 0  ;;  %s511_s24 = smov [#allocation2]   ;;  %s463_s28 = scalar_lea.hbm %s625_s3, 1024 }
   0x2   :  { %s25_s25 = sshll.u32 %s511_s24, 4  ;;  %p464_p0 = scmp.ne.s32.totalorder %s625_s3, %s463_s28  ;;  %s26_s25 = int_to_ptr.vmem [resolvable:$true] %s25_s25 }
   0x3   :  { %p467_p1 = scmp.lt.u32.totalorder %s463_s28, %s625_s3 }
   0x5   :  { %p469_p2 = pnand %p467_p1, %p464_p0 }
   0x7   :  { %472 = shalt.err (!%p469_p2)
}
   0x8   :  { %s473_s10 = scalar_lea.vmem %s26_s25, 1024  ;;  %p478_p4 = scmp.lt.s32.totalorder %s26_s25, %s26_s25 }
   0x9   :  { %p474_p3 = scmp.ne.s32.totalorder %s26_s25, %s473_s10  ;;  %p479_p5 = scmp.lt.s32.totalorder %s473_s10, %s473_s10 }
   0xb   :  { %p480_p6 = por %p479_p5, %p478_p4 }
   0xd   :  { %p481_p7 = pnand %p480_p6, %p474_p3 }
   0xf   :  { %484 = shalt.err (!%p481_p7)
}
  0x10   :  { %s512_s11 = smov 64   ;;  %s513_s12 = smov 4  }
  0x11   :  { %31 = dma.hbm_to_vmem [thread:$0]  %s625_s3, 1024, %s26_s25, [#allocation3], %s512_s11, %s512_s11, %s513_s12  }
  0x12   :  { %s514_s15 = smov [#allocation4]   ;;  %s485_s19 = scalar_lea.hbm %s627_s5, 1024 }
  0x13   :  { %s39_s16 = sshll.u32 %s514_s15, 4  ;;  %p486_p8 = scmp.ne.s32.totalorder %s627_s5, %s485_s19  ;;  %s40_s16 = int_to_ptr.vmem [resolvable:$true] %s39_s16 }
  0x14   :  { %p489_p9 = scmp.lt.u32.totalorder %s485_s19, %s627_s5 }
  0x16   :  { %p491_p10 = pnand %p489_p9, %p486_p8 }
  0x18   :  { %494 = shalt.err (!%p491_p10)
}
  0x19   :  { %s495_s24 = scalar_lea.vmem %s40_s16, 1024  ;;  %p500_p12 = scmp.lt.s32.totalorder %s40_s16, %s40_s16 }
  0x1a   :  { %p496_p11 = scmp.ne.s32.totalorder %s40_s16, %s495_s24  ;;  %p501_p13 = scmp.lt.s32.totalorder %s495_s24, %s495_s24 }
  0x1c   :  { %p502_p0 = por %p501_p13, %p500_p12 }
  0x1e   :  { %p503_p1 = pnand %p502_p0, %p496_p11 }
  0x20   :  { %506 = shalt.err (!%p503_p1)
}
  0x21   :  { %45 = dma.hbm_to_vmem [thread:$0]  %s627_s5, 1024, %s40_s16, [#allocation5], %s512_s11, %s512_s11, %s513_s12  }
  0x22   :  { %507 = dma.done.wait [#allocation3], 1024  }
  0x23   :  { %508 = vsyncadd [#allocation3], 4294966272 }
  0x24   :  { %509 = dma.done.wait [#allocation5], 1024  }
  0x25   :  { %510 = vsyncadd [#allocation5], 4294966272  ;;  %v515_v0 = vmov 0.0   ;;  %vm516_vm0 = vmmov 0   ;;  %v442_v1 = vld [vmem:[%s623_s1] sm:$0xff]   ;;  %vm72_vm1 = vcmask 130048  }
  0x26   :  { %390 = vmatprep.subr.bf16.mxu0 %v515_v0  ;;  %392 = vmatprep.mubr.msk.bf16.mxu0 %vm516_vm0, %v515_v0  ;;  %v55_v2 = vld [vmem:[%s622_s0] sm:$0xff]  ;;  %v444_v5 = vld [vmem:[#allocation2 + $0x8] sm:$0xff]   ;;  %v445_v6 = vld [vmem:[#allocation2 + $0x10] sm:$0xff]  }
  0x27   :  { %396 = vmatprep.subr.bf16.mxu1 %v515_v0  ;;  %412 = vmatprep.mubr.msk.bf16.mxu1 %vm516_vm0, %v515_v0  ;;  %v56_v3 = vpack.c.bf16 %v55_v2, %v55_v2  ;;  %v443_v4 = vld [vmem:[#allocation2] sm:$0xff]   ;;  %v446_v7 = vld [vmem:[#allocation2 + $0x18] sm:$0xff]   ;;  %v448_v9 = vld [vmem:[#allocation2 + $0x28] sm:$0xff]  }
  0x28   :  { %391 = vmatpush3.bf16.msra.mxu0 %v442_v1  ;;  %397 = vmatpush3.bf16.msra.mxu1 %v443_v4  ;;  %v447_v8 = vld [vmem:[#allocation2 + $0x20] sm:$0xff]   ;;  %v449_v10 = vld [vmem:[#allocation2 + $0x30] sm:$0xff]   ;;  %v450_v11 = vld [vmem:[#allocation2 + $0x38] sm:$0xff]  }
  0x29   :  { %416 = vmatprep.subr.bf16.mxu0 %v515_v0  ;;  %398 = vmatprep.subr.bf16.mxu1 %v515_v0  ;;  %v451_v12 = vld [vmem:[#allocation4] sm:$0xff]   ;;  %v452_v13 = vld [vmem:[#allocation4 + $0x8] sm:$0xff]   ;;  %v453_v14 = vld [vmem:[#allocation4 + $0x10] sm:$0xff]  }
  0x2a   :  { %v454_v15 = vld [vmem:[#allocation4 + $0x18] sm:$0xff]   ;;  %v349_v16 = vld [vmem:[%s624_s2] ss:$0 sm:$0xff]  ;;  %v456_v25 = vld [vmem:[#allocation4 + $0x28] sm:$0xff]  }
  0x2b   :  { %393 = vmatmul.mubr.msk.bf16.vlgmr.msra.gmra.mrb[0].mxu0 %vm72_vm1, %v56_v3  ;;  %v455_v24 = vld [vmem:[#allocation4 + $0x20] sm:$0xff]   ;;  %v457_v26 = vld [vmem:[#allocation4 + $0x30] sm:$0xff]   ;;  %v458_v27 = vld [vmem:[#allocation4 + $0x38] sm:$0xff]  }
  0x2c   :  { %432 = vmatprep.mubr.msk.bf16.mxu0 %vm516_vm0, %v515_v0  ;;  %399 = vmatpush3.bf16.msra.mxu1 %v444_v5  ;;  %v352_v28 = vld [vmem:[%s626_s4] ss:$0 sm:$0xff] }
  0x2d   :  { %400 = vmatprep.subr.bf16.mxu1 %v515_v0  ;;  %417 = vmatpush3.bf16.msra.mxu0 %v451_v12  ;;  %v361_v36 = vld [vmem:[%s628_s6] ss:$0 sm:$0xff] }
  0x2e   :  { %418 = vmatprep.subr.bf16.mxu0 %v515_v0 }
  0x30   :  { %401 = vmatpush3.bf16.msra.mxu1 %v445_v6 }
  0x31   :  { %402 = vmatprep.subr.bf16.mxu1 %v515_v0  ;;  %419 = vmatpush3.bf16.msra.mxu0 %v452_v13 }
  0x32   :  { %420 = vmatprep.subr.bf16.mxu0 %v515_v0 }
  0x34   :  { %403 = vmatpush3.bf16.msra.mxu1 %v446_v7 }
  0x35   :  { %404 = vmatprep.subr.bf16.mxu1 %v515_v0  ;;  %421 = vmatpush3.bf16.msra.mxu0 %v453_v14 }
  0x36   :  { %422 = vmatprep.subr.bf16.mxu0 %v515_v0 }
  0x38   :  { %405 = vmatpush3.bf16.msra.mxu1 %v447_v8 }
  0x39   :  { %406 = vmatprep.subr.bf16.mxu1 %v515_v0  ;;  %423 = vmatpush3.bf16.msra.mxu0 %v454_v15 }
  0x3a   :  { %424 = vmatprep.subr.bf16.mxu0 %v515_v0 }
  0x3c   :  { %407 = vmatpush3.bf16.msra.mxu1 %v448_v9 }
  0x3d   :  { %408 = vmatprep.subr.bf16.mxu1 %v515_v0  ;;  %425 = vmatpush3.bf16.msra.mxu0 %v455_v24 }
  0x3e   :  { %426 = vmatprep.subr.bf16.mxu0 %v515_v0 }
  0x40   :  { %409 = vmatpush3.bf16.msra.mxu1 %v449_v10 }
  0x41   :  { %410 = vmatprep.subr.bf16.mxu1 %v515_v0  ;;  %427 = vmatpush3.bf16.msra.mxu0 %v456_v25 }
  0x42   :  { %428 = vmatprep.subr.bf16.mxu0 %v515_v0 }
  0x44   :  { %411 = vmatpush3.bf16.msra.mxu1 %v450_v11 }
  0x45   :  { %429 = vmatpush3.bf16.msra.mxu0 %v457_v26 }
  0x46   :  { %430 = vmatprep.subr.bf16.mxu0 %v515_v0 }
  0x49   :  { %431 = vmatpush3.bf16.msra.mxu0 %v458_v27 }
  0xfe   :  { %v110_v17 = vpop.f32.mrb[0].mxu0 }
  0xff   :  { %v111_v18 = vadd.f32 %v349_v16, %v110_v17  ;;  %v394_v19 = vpop.f32.mrb[1].mxu0 }
 0x100   :  { %v113_v20 = vpop.f32.mrb[2].mxu0 }
 0x101   :  { %459 = vtanh.f32 %v111_v18  ;;  %v395_v21 = vpop.f32.mrb[3].mxu0 }
 0x10b   :  { %v460_v22 = vpop.eup %459 }
 0x10c   :  { %v117_v23 = vpack.c.bf16 %v460_v22, %v460_v22 }
 0x10e   :  { %413 = vmatmul.mubr.bf16.vlgmr.msra.gmra.mrb[0].mxu1 %v117_v23 }
 0x1e1   :  { %v223_v29 = vpop.f32.mrb[0].mxu1 }
 0x1e2   :  { %v224_v30 = vadd.f32 %v352_v28, %v223_v29  ;;  %v414_v31 = vpop.f32.mrb[1].mxu1 }
 0x1e3   :  { %v226_v32 = vpop.f32.mrb[2].mxu1 }
 0x1e4   :  { %461 = vtanh.f32 %v224_v30  ;;  %v415_v33 = vpop.f32.mrb[3].mxu1 }
 0x1ee   :  { %v462_v34 = vpop.eup %461 }
 0x1ef   :  { %v230_v35 = vpack.c.bf16 %v462_v34, %v462_v34 }
 0x1f1   :  { %433 = vmatmul.mubr.bf16.vlgmr.msra.gmra.mrb[4].mxu0 %v230_v35 }
 0x2c4   :  { %v336_v37 = vpop.f32.mrb[4].mxu0 }
 0x2c5   :  { %v337_v38 = vadd.f32 %v361_v36, %v336_v37  ;;  %v434_v39 = vpop.f32.mrb[5].mxu0 }
 0x2c6   :  { %v339_v40 = vpop.f32.mrb[6].mxu0 }
 0x2c7   :  { %342 = vst [vmem:[%s629_s7] sm:$0xff] %v337_v38  ;;  %v435_v41 = vpop.f32.mrb[7].mxu0 }
 0x2c8   :  { %347 = vsyncpa [#allocation3], 1 }
 0x2c9   :  { %348 = vsyncpa [#allocation5], 1 }

</bundles_post_ra>
